<compile_context>
chip_gen: v7x
topology: tpu7x:2x2x1
jax: 0.10.0
libtpu: 0.0.40
codegen_flags: <defaults>
</compile_context>

<pallas_src>
import functools

import jax
import jax.numpy as jnp
from jax.experimental import pallas as pl
from jax.experimental.pallas import tpu as pltpu

_LANE = 128
_VMEM_BUDGET = 40 * 1024 * 1024        # conservative: fits v7x 64 MiB/TC w/ headroom
_TARGET_STEP_BYTES = 2 * 1024 * 1024   # amortize ~0.35 us fixed per-grid-step cost
_MAX_TN = 2048


def _round_up(v, m):
    return -(-v // m) * m


def _csl_kernel(x_ref, wl_ref, gb_ref, out_ref):
    # x_ref:   (1, TN, dim_in)
    # wl_ref:  (dim_in, dim_out_p)      -- VMEM resident (constant index map)
    # gb_ref:  (1, 2, dim_out_p) f32    -- row 0: gate, row 1: bl*gate + ctx@Wb
    # out_ref: (1, TN, dim_out_p)
    y = jnp.dot(x_ref[0], wl_ref[...], preferred_element_type=jnp.float32)
    gb = gb_ref[0]                                  # (2, dim_out_p) f32
    out = y * gb[0:1, :] + gb[1:2, :]               # single FMA, broadcast over rows
    out_ref[0] = out.astype(out_ref.dtype)


def _plan_tiles(batch, n, dim_in, dim_out, x_bytes, out_bytes, wl_bytes,
                single_buffer_wl):
    """Row tile TN, grid length and VMEM limit derived from actual buffer sizes."""
    sublane = 16 if x_bytes < 4 else 8          # bf16 packs 16 rows per vreg
    # HBM bytes streamed per row (x in + out back): amortize per-step overhead.
    per_row_hbm = dim_in * x_bytes + dim_out * out_bytes
    tn = max(1, _TARGET_STEP_BYTES // max(per_row_hbm, 1))
    tn = min(tn, _MAX_TN, _round_up(n, sublane))
    tn = _round_up(max(tn, sublane), sublane)

    # Resident VMEM: Wl (1x when single-buffered) + merged gate/bias (tiny).
    wl_vmem = dim_in * dim_out * wl_bytes * (1 if single_buffer_wl else 2)
    gb_vmem = 2 * 2 * dim_out * 4
    # Streaming VMEM per row (double-buffered x and out tiles).
    per_row_vmem = 2 * (dim_in * x_bytes + dim_out * out_bytes)
    avail = _VMEM_BUDGET - wl_vmem - gb_vmem - (1 << 20)   # 1 MiB compiler slack
    if avail >= per_row_vmem * sublane:
        tn_cap = (avail // per_row_vmem) // sublane * sublane
        tn = max(sublane, min(tn, tn_cap))

    grid_n = pl.cdiv(n, tn)
    # v7x megacore: make sure both TensorCores get work when B == 1.
    if batch * grid_n < 2 and n > sublane:
        tn = _round_up(pl.cdiv(n, 2), sublane)
        grid_n = pl.cdiv(n, tn)

    vmem_needed = wl_vmem + gb_vmem + tn * per_row_vmem + (1 << 20)
    vmem_limit = int(min(max(vmem_needed, 32 << 20), 64 << 20))
    return tn, grid_n, vmem_limit


@functools.partial(jax.jit, static_argnames=("single_buffer_wl",))
def _csl_forward(ctx, x, wl, bl, wg, bg, wb, *, single_buffer_wl):
    B, N, dim_in = x.shape
    dim_ctx = ctx.shape[-1]
    dim_out = wl.shape[1]

    # ---- lane-dense output: pad weights' out-dim to a multiple of 128 -------
    dim_out_p = _round_up(dim_out, _LANE)
    if dim_out_p != dim_out:
        pad = dim_out_p - dim_out
        wl = jnp.pad(wl, ((0, 0), (0, pad)))
        bl = jnp.pad(bl, ((0, pad),))
        wg = jnp.pad(wg, ((0, 0), (0, pad)))
        bg = jnp.pad(bg, ((0, pad),))
        wb = jnp.pad(wb, ((0, 0), (0, pad)))
    # TODO(synk): in a full network, keep activations at dim_out_p and slice
    # once at the very end instead of per layer.

    # ---- hoisted hyper-network: one tiny batched matmul, layer bias folded --
    ctx2 = ctx.reshape(B, dim_ctx).astype(jnp.float32)
    gate = jax.nn.sigmoid(ctx2 @ wg.astype(jnp.float32) + bg.astype(jnp.float32))
    cbias = gate * bl.astype(jnp.float32) + ctx2 @ wb.astype(jnp.float32)
    gb = jnp.stack([gate, cbias], axis=1)          # (B, 2, dim_out_p) f32

    # Matching dtypes on the MXU path (bf16 or f32); epilogue stays f32.
    wl = wl.astype(x.dtype)

    x_bytes = x.dtype.itemsize
    out_bytes = x.dtype.itemsize
    tn, grid_n, vmem_limit = _plan_tiles(
        B, N, dim_in, dim_out_p, x_bytes, out_bytes, wl.dtype.itemsize,
        single_buffer_wl)

    wl_spec_kwargs = {}
    if single_buffer_wl:
        # Block index never changes -> no need for a double buffer on v7x.
        wl_spec_kwargs["pipeline_mode"] = pl.Buffered(1)
    wl_spec = pl.BlockSpec((dim_in, dim_out_p), lambda b, n: (0, 0),
                           **wl_spec_kwargs)

    cost = pl.CostEstimate(
        flops=2 * B * N * dim_in * dim_out_p,
        transcendentals=0,
        bytes_accessed=(x.size * x_bytes + wl.size * wl.dtype.itemsize
                        + gb.size * 4 + B * N * dim_out_p * out_bytes),
    )

    out = pl.pallas_call(
        _csl_kernel,
        out_shape=jax.ShapeDtypeStruct((B, N, dim_out_p), x.dtype),
        grid_spec=pltpu.PrefetchScalarGridSpec(
            num_scalar_prefetch=0,
            grid=(B, grid_n),
            in_specs=[
                pl.BlockSpec((1, tn, dim_in), lambda b, n: (b, n, 0)),   # x tile
                wl_spec,                                                 # Wl resident
                pl.BlockSpec((1, 2, dim_out_p), lambda b, n: (b, 0, 0)), # gate+bias
            ],
            out_specs=pl.BlockSpec((1, tn, dim_out_p), lambda b, n: (b, n, 0)),
        ),
        compiler_params=pltpu.CompilerParams(
            dimension_semantics=("parallel", "parallel"),
            vmem_limit_bytes=vmem_limit,
        ),
        cost_estimate=cost,
    )(x, wl, gb)

    if dim_out_p != dim_out:
        out = out[..., :dim_out]
    return out


def concat_squash_linear(ctx, x, params):
    """ctx: (B, 1, dim_ctx) or (B, dim_ctx); x: (B, N, dim_in) -> (B, N, dim_out)."""
    wl, bl, wg, bg, wb = params
    try:
        # Preferred: single-buffer the resident Wl (saves VMEM on v7x 64 MiB parts).
        return _csl_forward(ctx, x, wl, bl, wg, bg, wb, single_buffer_wl=True)
    except Exception:
        # Fallback if this jax/libtpu rejects pipeline_mode on a top-level BlockSpec.
        return _csl_forward(ctx, x, wl, bl, wg, bg, wb, single_buffer_wl=False)


def init_params(key, dim_in, dim_out, dim_ctx, dtype=jnp.float32):
    """Deterministic init mirroring nn.Linear shapes; weights stored as (in, out)."""
    k1, k2, k3, k4, k5 = jax.random.split(key, 5)
    wl = jax.random.normal(k1, (dim_in, dim_out), dtype) * 0.1   # _layer.weight^T
    bl = jax.random.normal(k2, (dim_out,), dtype) * 0.1          # _layer.bias
    wg = jax.random.normal(k3, (dim_ctx, dim_out), dtype) * 0.1  # _hyper_gate.weight^T
    bg = jax.random.normal(k4, (dim_out,), dtype) * 0.1          # _hyper_gate.bias
    wb = jax.random.normal(k5, (dim_ctx, dim_out), dtype) * 0.1  # _hyper_bias.weight^T
    return (wl, bl, wg, bg, wb)


def _reference(ctx, x, params):
    wl, bl, wg, bg, wb = params
    gate = jax.nn.sigmoid(ctx @ wg + bg)
    bias = ctx @ wb
    return (x @ wl + bl) * gate + bias


if __name__ == "__main__":
    key = jax.random.PRNGKey(0)
    kx, kc, kp = jax.random.split(key, 3)

    # ---- main case: lane-dense dim_out = 128, tile-aligned N ----------------
    B, N = 2, 128
    dim_in, dim_out, dim_ctx = 64, 128, 32
    x = jax.random.normal(kx, (B, N, dim_in), jnp.float32)
    ctx = jax.random.normal(kc, (B, 1, dim_ctx), jnp.float32)
    params = init_params(kp, dim_in, dim_out, dim_ctx)

    out = jax.block_until_ready(concat_squash_linear(ctx, x, params))
    ref = _reference(ctx, x, params)
    assert out.shape == (B, N, dim_out)
    assert jnp.allclose(out, ref, atol=1e-5, rtol=1e-5)

    # ---- ragged N (no wrapper pad/slice: boundary-block masked writeback) ---
    N2 = 50
    x2 = jax.random.normal(kx, (B, N2, dim_in), jnp.float32)
    out2 = jax.block_until_ready(concat_squash_linear(ctx, x2, params))
    ref2 = _reference(ctx, x2, params)
    assert out2.shape == (B, N2, dim_out)
    assert jnp.allclose(out2, ref2, atol=1e-5, rtol=1e-5)

    # ---- bf16 I/O path (sublane rounding of 16, f32 accumulate/epilogue) ----
    N3 = 200
    x3 = jax.random.normal(kx, (B, N3, dim_in), jnp.float32).astype(jnp.bfloat16)
    out3 = jax.block_until_ready(concat_squash_linear(ctx, x3, params))
    ref3 = _reference(ctx, x3.astype(jnp.float32), params)
    assert out3.shape == (B, N3, dim_out)
    assert jnp.allclose(out3.astype(jnp.float32), ref3, atol=1e-1, rtol=1e-1)

    # ---- decoder-style dim_out = 3: weights padded to 128 lanes internally --
    params_small = init_params(kp, dim_in, 3, dim_ctx)
    N4 = 40
    x4 = jax.random.normal(kx, (B, N4, dim_in), jnp.float32)
    out4 = jax.block_until_ready(concat_squash_linear(ctx, x4, params_small))
    ref4 = _reference(ctx, x4, params_small)
    assert out4.shape == (B, N4, 3)
    assert jnp.allclose(out4, ref4, atol=1e-5, rtol=1e-5)

    print("KERNEL_OK")
</pallas_src>

<mosaic_0001>
module attributes {stable_mosaic.version = 11 : i64} {
  func.func @_csl_kernel(%arg0: i32, %arg1: i32, %arg2: memref<1x128x64xf32, #tpu.memory_space<vmem>>, %arg3: memref<64x128xf32, #tpu.memory_space<vmem>>, %arg4: memref<1x2x128xf32, #tpu.memory_space<vmem>>, %arg5: memref<1x128x128xf32, #tpu.memory_space<vmem>>) attributes {dimension_semantics = [#tpu.dimension_semantics<parallel>, #tpu.dimension_semantics<parallel>], iteration_bounds = array<i64: 2, 1>, scalar_prefetch = 0 : i64, scratch_operands = 0 : i64, tpu.core_type = #tpu.core_type<tc>, window_params = [{transform_indices = @transform_0, window_bounds = array<i64: 1, 128, 64>}, {pipeline_mode = #tpu.pipeline_mode<synchronous>, transform_indices = @transform_1, window_bounds = array<i64: 64, 128>}, {transform_indices = @transform_2, window_bounds = array<i64: 1, 2, 128>}, {transform_indices = @transform_3, window_bounds = array<i64: 1, 128, 128>}]} {
    %c0 = arith.constant 0 : index
    %c0_0 = arith.constant 0 : index
    %c0_1 = arith.constant 0 : index
    %0 = vector.load %arg2[%c0, %c0_0, %c0_1] : memref<1x128x64xf32, #tpu.memory_space<vmem>>, vector<1x128x64xf32>
    %1 = vector.shape_cast %0 : vector<1x128x64xf32> to vector<128x64xf32>
    %c0_2 = arith.constant 0 : index
    %c0_3 = arith.constant 0 : index
    %2 = vector.load %arg3[%c0_2, %c0_3] : memref<64x128xf32, #tpu.memory_space<vmem>>, vector<64x128xf32>
    %cst = arith.constant dense<0.000000e+00> : vector<128x128xf32>
    %3 = tpu.matmul %1, %2, %cst {dimension_numbers = #tpu.dot_dimension_numbers<[1], [0], [0], [1], [0, 0, 1, 1], [], []>} : vector<128x64xf32>, vector<64x128xf32>, vector<128x128xf32> -> vector<128x128xf32>
    %c0_4 = arith.constant 0 : index
    %c0_5 = arith.constant 0 : index
    %c0_6 = arith.constant 0 : index
    %4 = vector.load %arg4[%c0_4, %c0_5, %c0_6] : memref<1x2x128xf32, #tpu.memory_space<vmem>>, vector<1x2x128xf32>
    %5 = vector.shape_cast %4 : vector<1x2x128xf32> to vector<2x128xf32>
    %6 = vector.extract_strided_slice %5 {offsets = [0, 0], sizes = [1, 128], strides = [1, 1]} : vector<2x128xf32> to vector<1x128xf32>
    %7 = vector.broadcast %6 : vector<1x128xf32> to vector<128x128xf32>
    %8 = arith.mulf %3, %7 : vector<128x128xf32>
    %9 = vector.extract_strided_slice %5 {offsets = [1, 0], sizes = [1, 128], strides = [1, 1]} : vector<2x128xf32> to vector<1x128xf32>
    %10 = vector.broadcast %9 : vector<1x128xf32> to vector<128x128xf32>
    %11 = arith.addf %8, %10 : vector<128x128xf32>
    %c0_7 = arith.constant 0 : index
    %c0_8 = arith.constant 0 : index
    %c0_9 = arith.constant 0 : index
    %12 = vector.load %arg5[%c0_7, %c0_8, %c0_9] : memref<1x128x128xf32, #tpu.memory_space<vmem>>, vector<1x128x128xf32>
    %13 = vector.shape_cast %12 : vector<1x128x128xf32> to vector<128x128xf32>
    %14 = vector.shape_cast %11 : vector<128x128xf32> to vector<1x128x128xf32>
    tpu.vector_store %arg5[%c0_7, %c0_8, %c0_9], %14 {strides = array<i32>} : memref<1x128x128xf32, #tpu.memory_space<vmem>>, vector<1x128x128xf32>,
    return
  }
  func.func @transform_0(%arg0: i32, %arg1: i32) -> (i32, i32, i32) {
    %c0_i32 = arith.constant 0 : i32
    %c0_i32_0 = arith.constant 0 : i32
    return %arg0, %arg1, %c0_i32 : i32, i32, i32
  }
  func.func @transform_1(%arg0: i32, %arg1: i32) -> (i32, i32) {
    %c0_i32 = arith.constant 0 : i32
    %c0_i32_0 = arith.constant 0 : i32
    %c0_i32_1 = arith.constant 0 : i32
    return %c0_i32, %c0_i32_0 : i32, i32
  }
  func.func @transform_2(%arg0: i32, %arg1: i32) -> (i32, i32, i32) {
    %c0_i32 = arith.constant 0 : i32
    %c0_i32_0 = arith.constant 0 : i32
    %c0_i32_1 = arith.constant 0 : i32
    return %arg0, %c0_i32, %c0_i32_0 : i32, i32, i32
  }
  func.func @transform_3(%arg0: i32, %arg1: i32) -> (i32, i32, i32) {
    %c0_i32 = arith.constant 0 : i32
    %c0_i32_0 = arith.constant 0 : i32
    return %arg0, %arg1, %c0_i32 : i32, i32, i32
  }
}

module attributes {stable_mosaic.version = 11 : i64} {
  func.func @_csl_kernel(%arg0: i32, %arg1: i32, %arg2: memref<1x128x64xf32, #tpu.memory_space<vmem>>, %arg3: memref<64x128xf32, #tpu.memory_space<vmem>>, %arg4: memref<1x2x128xf32, #tpu.memory_space<vmem>>, %arg5: memref<1x128x128xf32, #tpu.memory_space<vmem>>) attributes {dimension_semantics = [#tpu.dimension_semantics<parallel>, #tpu.dimension_semantics<parallel>], iteration_bounds = array<i64: 2, 1>, scalar_prefetch = 0 : i64, scratch_operands = 0 : i64, tpu.core_type = #tpu.core_type<tc>, window_params = [{transform_indices = @transform_0, window_bounds = array<i64: 1, 128, 64>}, {pipeline_mode = #tpu.pipeline_mode<synchronous>, transform_indices = @transform_1, window_bounds = array<i64: 64, 128>}, {transform_indices = @transform_2, window_bounds = array<i64: 1, 2, 128>}, {transform_indices = @transform_3, window_bounds = array<i64: 1, 128, 128>}]} {
    %c0 = arith.constant 0 : index
    %c0_0 = arith.constant 0 : index
    %c0_1 = arith.constant 0 : index
    %0 = vector.load %arg2[%c0, %c0_0, %c0_1] : memref<1x128x64xf32, #tpu.memory_space<vmem>>, vector<1x128x64xf32>
    %1 = vector.shape_cast %0 : vector<1x128x64xf32> to vector<128x64xf32>
    %c0_2 = arith.constant 0 : index
    %c0_3 = arith.constant 0 : index
    %2 = vector.load %arg3[%c0_2, %c0_3] : memref<64x128xf32, #tpu.memory_space<vmem>>, vector<64x128xf32>
    %cst = arith.constant dense<0.000000e+00> : vector<128x128xf32>
    %3 = tpu.matmul %1, %2, %cst {dimension_numbers = #tpu.dot_dimension_numbers<[1], [0], [0], [1], [0, 0, 1, 1], [], []>} : vector<128x64xf32>, vector<64x128xf32>, vector<128x128xf32> -> vector<128x128xf32>
    %c0_4 = arith.constant 0 : index
    %c0_5 = arith.constant 0 : index
    %c0_6 = arith.constant 0 : index
    %4 = vector.load %arg4[%c0_4, %c0_5, %c0_6] : memref<1x2x128xf32, #tpu.memory_space<vmem>>, vector<1x2x128xf32>
    %5 = vector.shape_cast %4 : vector<1x2x128xf32> to vector<2x128xf32>
    %6 = vector.extract_strided_slice %5 {offsets = [0, 0], sizes = [1, 128], strides = [1, 1]} : vector<2x128xf32> to vector<1x128xf32>
    %7 = vector.broadcast %6 : vector<1x128xf32> to vector<128x128xf32>
    %8 = arith.mulf %3, %7 : vector<128x128xf32>
    %9 = vector.extract_strided_slice %5 {offsets = [1, 0], sizes = [1, 128], strides = [1, 1]} : vector<2x128xf32> to vector<1x128xf32>
    %10 = vector.broadcast %9 : vector<1x128xf32> to vector<128x128xf32>
    %11 = arith.addf %8, %10 : vector<128x128xf32>
    %c0_7 = arith.constant 0 : index
    %c0_8 = arith.constant 0 : index
    %c0_9 = arith.constant 0 : index
    %12 = vector.load %arg5[%c0_7, %c0_8, %c0_9] : memref<1x128x128xf32, #tpu.memory_space<vmem>>, vector<1x128x128xf32>
    %13 = vector.shape_cast %12 : vector<1x128x128xf32> to vector<128x128xf32>
    %14 = vector.shape_cast %11 : vector<128x128xf32> to vector<1x128x128xf32>
    tpu.vector_store %arg5[%c0_7, %c0_8, %c0_9], %14 {strides = array<i32>} : memref<1x128x128xf32, #tpu.memory_space<vmem>>, vector<1x128x128xf32>,
    return
  }
  func.func @transform_0(%arg0: i32, %arg1: i32) -> (i32, i32, i32) {
    %c0_i32 = arith.constant 0 : i32
    %c0_i32_0 = arith.constant 0 : i32
    return %arg0, %arg1, %c0_i32 : i32, i32, i32
  }
  func.func @transform_1(%arg0: i32, %arg1: i32) -> (i32, i32) {
    %c0_i32 = arith.constant 0 : i32
    %c0_i32_0 = arith.constant 0 : i32
    %c0_i32_1 = arith.constant 0 : i32
    return %c0_i32, %c0_i32_0 : i32, i32
  }
  func.func @transform_2(%arg0: i32, %arg1: i32) -> (i32, i32, i32) {
    %c0_i32 = arith.constant 0 : i32
    %c0_i32_0 = arith.constant 0 : i32
    %c0_i32_1 = arith.constant 0 : i32
    return %arg0, %c0_i32, %c0_i32_0 : i32, i32, i32
  }
  func.func @transform_3(%arg0: i32, %arg1: i32) -> (i32, i32, i32) {
    %c0_i32 = arith.constant 0 : i32
    %c0_i32_0 = arith.constant 0 : i32
    return %arg0, %arg1, %c0_i32 : i32, i32, i32
  }
}

</mosaic_0001>

<bundles_post_ra>
// kernel: _csl_forward.1
= control target key start
LH: loop header
LB: loop body
LE: loop exit
PB: predicated region body
PF: predicated region fallthrough
CT: control target
= control target key end

     0   :  { %8 = vsyncpa [#allocation3], 0  ;;  %s1100_s0 = inlined_call_operand.vmem [shape: f32[2,128,64], index: 0, kind: input, shape index: {}]   ;;  %s1101_s1 = inlined_call_operand.vmem [shape: f32[64,128], index: 1, kind: input, shape index: {}]   ;;  %s1102_s2 = inlined_call_operand.vmem [shape: f32[2,2,128], index: 2, kind: input, shape index: {}]   ;;  %s1103_s3 = inlined_call_operand.hbm [shape: f32[2,128,128], index: 3, kind: output, shape index: {}]  }
   0x1   :  { %10 = vsyncpa [#allocation3 + $0x1], 0  ;;  %s879_s12 = smov 0   ;;  %s881_s13 = smov 0  }
   0x2   :  { %s883_s14 = smov 0   ;;  %s885_s15 = smov 0  }
   0x3   :  { %s887_s16 = smov 0   ;;  %s889_s17 = smov 0  }
   0x4 LB: > { %s599_s18 = sadd.s32 4294967295, %s854_s17   ;;  %s600_s19 = sadd.s32 4294967294, %s854_s17   ;;  %s854_s17 = sphi %s889_s17, %s16_s17   ;;  %s850_s16 = sphi %s887_s16, %s1110_s16   ;;  %s846_s15 = sphi %s885_s15, %s1109_s15   ;;  %s842_s14 = sphi %s883_s14, %s1108_s14   ;;  %s838_s13 = sphi %s881_s13, %s1107_s13   ;;  %s834_s12 = sphi %s879_s12, %s1106_s12  }
   0x5   : > { %s28_s20 = sadd.s32 1, %s850_s16  ;;  %s112_s21 = sadd.s32 1, %s842_s14 }
   0x6   : > { %p30_p0 = scmp.ge.s32.totalorder %s28_s20, 2  ;;  %p122_p1 = scmp.ne.s32.totalorder %s842_s14, %s838_s13 }
   0x7   : > { %p123_p2 = scmp.eq.s32.totalorder %s599_s18, 1  ;;  %p128_p3 = scmp.ne.s32.totalorder %s838_s13, %s834_s12 }
   0x8   : > { %s1112_s20 = smov (%p30_p0, %s28_s20), 0  ;;  %p129_p5 = scmp.eq.s32.totalorder %s600_s19, 1 }
   0x9   : > { %p919_p4 = por %p123_p2, %p122_p1  ;;  %s107_s23 = ssub.s32 %s850_s16, %s1112_s20 }
   0xa   : > { %p603_p6 = scmp.ge.s32.totalorder %s854_s17, 1  ;;  %p110_p7 = scmp.eq.s32.totalorder %s107_s23, 0 }
   0xb   : > { %p926_p8 = por %p129_p5, %p128_p3  ;;  %p170_p9 = scmp.lt.s32.totalorder %s854_s17, 3 }
   0xc   : > { %s932_s25 = scalar_select %p110_p7, %s842_s14, %s112_s21  }
   0xd   : > { %p171_p10 = pnand %p603_p6, %p170_p9 }
   0xe   : > { %v233_v0 = vld [vmem:[%s1101_s1] sm:$0xff] (!%p171_p10)  ;;  %v234_v1 = vld [vmem:[%s1101_s1 + $0x8] sm:$0xff] (!%p171_p10)  ;;  %v235_v2 = vld [vmem:[%s1101_s1 + $0x10] sm:$0xff] (!%p171_p10)  ;;  %p203_p11 = scmp.lt.s32.totalorder (!%p171_p10), %s846_s15, 1  ;;  %vm241_vm0 = vcmask (!%p171_p10), 523264   ;;  %v436_v28 = vlaneseq (!%p171_p10)  ;;  %s199_s7 = sand.u32 (!%p171_p10), 1, %s838_s13  }
   0xf   : > { %174 = sbr.rel (%p171_p10) target bundleno = 277 (0x115), region = 32  ;;  %v695_v3 = vpack.c.bf16 (!%p171_p10), %v234_v1, %v233_v0  ;;  %v236_v4 = vld [vmem:[%s1101_s1 + $0x18] sm:$0xff] (!%p171_p10)  ;;  %v237_v6 = vld [vmem:[%s1101_s1 + $0x20] sm:$0xff] (!%p171_p10)  ;;  %v238_v7 = vld [vmem:[%s1101_s1 + $0x28] sm:$0xff] (!%p171_p10)  ;;  %s604_s8 = sshll.u32 (!%p171_p10), %s199_s7, 7 }
  0x10   : > { %v699_v5 = vpack.c.bf16 (!%p171_p10), %v236_v4, %v235_v2  ;;  %v703_v8 = vpack.c.bf16 (!%p171_p10), %v238_v7, %v237_v6  ;;  %v239_v9 = vld [vmem:[%s1101_s1 + $0x30] sm:$0xff] (!%p171_p10)  ;;  %v240_v10 = vld [vmem:[%s1101_s1 + $0x38] sm:$0xff] (!%p171_p10)  ;;  %v437_v29 = vshrl.u32 (!%p171_p10), %v436_v28, 7  ;;  %s1013_s9 = scalar_lea.vmem (!%p171_p10), [#allocation2], %s604_s8  ;;  %s630_s10 = sshll.u32 (!%p171_p10), %s846_s15, 11 }
  0x11   : > { %696 = vmatprep.subr.bf16.mxu0 (!%p171_p10), %v695_v3  ;;  %711 = vmatprep.subr.bf16.mxu1 (!%p171_p10), %v695_v3  ;;  %v707_v13 = vpack.c.bf16 (!%p171_p10), %v240_v10, %v239_v9  ;;  %s1042_s19 = scalar_lea.hbm (!%p171_p10), %s1103_s3, %s630_s10  ;;  %s1054_s21 = scalar_lea.sflag (!%p171_p10), [#allocation3], %s199_s7 }
  0x12   : > { %698 = vmatpush3.bf16.msra.mxu0 (!%p171_p10), %v695_v3  ;;  %715 = vmatpush3.bf16.msra.mxu1 (!%p171_p10), %v695_v3  ;;  %v438_v30 = vsub.s32 (!%p171_p10), 0, %v437_v29  ;;  %v458_v32 = vsub.s32 (!%p171_p10), 1, %v437_v29  ;;  %s856_s26 = smov (!%p171_p10), [#allocation2]  }
  0x13   : > { %700 = vmatprep.subr.bf16.mxu0 (!%p171_p10), %v699_v5  ;;  %712 = vmatprep.subr.bf16.mxu1 (!%p171_p10), %v699_v5 }
  0x16   : > { %s954_s11 = scalar_select %p203_p11, %s846_s15, 1  ;;  %702 = vmatpush3.bf16.msra.mxu0 %v699_v5  ;;  %716 = vmatpush3.bf16.msra.mxu1 %v699_v5 }
  0x17   : > { %704 = vmatprep.subr.bf16.mxu0 %v703_v8  ;;  %713 = vmatprep.subr.bf16.mxu1 %v703_v8 }
  0x18   : > { %s629_s18 = sshll.u32 %s954_s11, 7  ;;  %s607_s30 = sshll.u32 %s954_s11, 1 }
  0x19   : > { %s963_s27 = scalar_lea.vmem %s1100_s0, %s629_s18  ;;  %s215_s6 = scalar_lea.vmem %s1102_s2, %s607_s30 }
  0x1a   : > { %v217_v11 = vld [vmem:[%s963_s27] sm:$0xff]  ;;  %706 = vmatpush3.bf16.msra.mxu0 %v703_v8  ;;  %717 = vmatpush3.bf16.msra.mxu1 %v703_v8  ;;  %v218_v14 = vld [vmem:[%s963_s27 + $0x8] sm:$0xff]  ;;  %v219_v16 = vld [vmem:[%s963_s27 + $0x10] sm:$0xff]  ;;  %s508_s11 = sshll.u32 %s1013_s9, 4  ;;  %s1044_s11 = int_to_ptr.vmem [resolvable:$true] %s508_s11 }
  0x1b   : > { %v225_v12 = vld [vmem:[%s963_s27 + $0x40] sm:$0xff]  ;;  %671 = vmatprep.mubr.msk.f32.mxu0 %vm241_vm0, %v217_v11  ;;  %708 = vmatprep.subr.bf16.mxu0 %v707_v13  ;;  %v226_v15 = vld [vmem:[%s963_s27 + $0x48] sm:$0xff]  ;;  %v227_v17 = vld [vmem:[%s963_s27 + $0x50] sm:$0xff]  ;;  %s776_s23 = scalar_lea.vmem %s1044_s11, 2048 }
  0x1c   : > { %683 = vmatprep.mubr.msk.f32.mxu1 %vm241_vm0, %v225_v12  ;;  %714 = vmatprep.subr.bf16.mxu1 %v707_v13  ;;  %v220_v18 = vld [vmem:[%s963_s27 + $0x18] sm:$0xff]  ;;  %v221_v20 = vld [vmem:[%s963_s27 + $0x20] sm:$0xff]  ;;  %v222_v22 = vld [vmem:[%s963_s27 + $0x28] sm:$0xff]  ;;  %p777_p12 = scmp.ne.s32.totalorder %s1044_s11, %s776_s23 }
  0x1d   : > { %v228_v19 = vld [vmem:[%s963_s27 + $0x58] sm:$0xff]  ;;  %v229_v21 = vld [vmem:[%s963_s27 + $0x60] sm:$0xff]  ;;  %v230_v23 = vld [vmem:[%s963_s27 + $0x68] sm:$0xff] }
  0x1e   : > { %710 = vmatpush3.bf16.msra.mxu0 %v707_v13  ;;  %718 = vmatpush3.bf16.msra.mxu1 %v707_v13  ;;  %v223_v24 = vld [vmem:[%s963_s27 + $0x30] sm:$0xff]  ;;  %v224_v26 = vld [vmem:[%s963_s27 + $0x38] sm:$0xff]  ;;  %v435_v31 = vld [vmem:[%s215_s6] sm:$0x3]  ;;  %p778_p13 = pnand %p777_p12, %p919_p4 }
  0x1f   : > { %v231_v25 = vld [vmem:[%s963_s27 + $0x70] sm:$0xff]  ;;  %v232_v27 = vld [vmem:[%s963_s27 + $0x78] sm:$0xff]  ;;  %v439_v33 = vrot.slane %v435_v31, %v438_v30  ;;  %v1005_v34 = vrot.slane %v435_v31, %v458_v32  ;;  %s780_s27 = sshll.u32 %s856_s26, 4  ;;  %s781_s27 = int_to_ptr.vmem [resolvable:$false] %s780_s27 }
  0x20   : > { %p779_p0 = pneg %p778_p13  ;;  %s782_s28 = scalar_lea.vmem %s781_s27, 4096 }
  0x21   : > { %672 = vmatmul.mubr.msk.f32.vlgmr.msra.gmra.mrb[0].mxu0 %vm241_vm0, %v218_v14  ;;  %684 = vmatmul.mubr.msk.f32.vlgmr.msra.gmra.mrb[0].mxu1 %vm241_vm0, %v226_v15  ;;  %p783_p1 = scmp.lt.s32.totalorder %s1044_s11, %s781_s27  ;;  %p784_p2 = scmp.lt.s32.totalorder %s782_s28, %s776_s23 }
  0x22   : > { %674 = vmatprep.mubr.msk.f32.mxu0 %vm241_vm0, %v219_v16  ;;  %686 = vmatprep.mubr.msk.f32.mxu1 %vm241_vm0, %v227_v17 }
  0x23   : > { %p785_p3 = por %p784_p2, %p783_p1 }
  0x25   : > { %675 = vmatmul.mubr.msk.f32.gmra.mrb[2].mxu0 %vm241_vm0, %v220_v18  ;;  %687 = vmatmul.mubr.msk.f32.gmra.mrb[2].mxu1 %vm241_vm0, %v228_v19  ;;  %p786_p5 = pnand %p785_p3, %p779_p0 }
  0x26   : > { %677 = vmatprep.mubr.msk.f32.mxu0 %vm241_vm0, %v221_v20  ;;  %689 = vmatprep.mubr.msk.f32.mxu1 %vm241_vm0, %v229_v21 }
  0x29   : > { %678 = vmatmul.mubr.msk.f32.gmra.mrb[4].mxu0 %vm241_vm0, %v222_v22  ;;  %690 = vmatmul.mubr.msk.f32.gmra.mrb[4].mxu1 %vm241_vm0, %v230_v23 }
  0x2a   : > { %680 = vmatprep.mubr.msk.f32.mxu0 %vm241_vm0, %v223_v24  ;;  %692 = vmatprep.mubr.msk.f32.mxu1 %vm241_vm0, %v231_v25 }
  0x2d   : > { %681 = vmatmul.mubr.msk.f32.gmra.mrb[6].mxu0 %vm241_vm0, %v224_v26  ;;  %693 = vmatmul.mubr.msk.f32.gmra.mrb[6].mxu1 %vm241_vm0, %v232_v27 }
  0xf4   : > { %v673_v35 = vpop.f32.mrb[0].mxu0  ;;  %v685_v36 = vpop.f32.mrb[0].mxu1 }
  0xf5   : > { %v441_v37 = vmul.f32 %v673_v35, %v439_v33  ;;  %v449_v38 = vmul.f32 %v685_v36, %v439_v33  ;;  %v356_v39 = vpop.f32.mrb[1].mxu0  ;;  %v396_v40 = vpop.f32.mrb[1].mxu1 }
  0xf6   : > { %v440_v41 = vmul.f32 %v439_v33, %v356_v39  ;;  %v448_v42 = vmul.f32 %v439_v33, %v396_v40 }
  0xf7   : > { %v461_v43 = vadd.f32 %v1005_v34, %v441_v37  ;;  %v469_v44 = vadd.f32 %v1005_v34, %v449_v38 }
  0xf8   : > { %v460_v45 = vadd.f32 %v1005_v34, %v440_v41  ;;  %v468_v46 = vadd.f32 %v1005_v34, %v448_v42  ;;  %v676_v47 = vpop.f32.mrb[2].mxu0  ;;  %v688_v48 = vpop.f32.mrb[2].mxu1 }
  0xf9   : > { %477 = vst [vmem:[%s1013_s9 + $0x8] sm:$0xff] %v461_v43  ;;  %485 = vst [vmem:[%s1013_s9 + $0x48] sm:$0xff] %v469_v44  ;;  %v443_v49 = vmul.f32 %v676_v47, %v439_v33  ;;  %v451_v50 = vmul.f32 %v688_v48, %v439_v33  ;;  %v366_v51 = vpop.f32.mrb[3].mxu0  ;;  %v406_v52 = vpop.f32.mrb[3].mxu1 }
  0xfa   : > { %476 = vst [vmem:[%s1013_s9] sm:$0xff] %v460_v45  ;;  %484 = vst [vmem:[%s1013_s9 + $0x40] sm:$0xff] %v468_v46  ;;  %v442_v53 = vmul.f32 %v439_v33, %v366_v51  ;;  %v450_v54 = vmul.f32 %v439_v33, %v406_v52 }
  0xfb   : > { %v463_v55 = vadd.f32 %v1005_v34, %v443_v49  ;;  %v471_v56 = vadd.f32 %v1005_v34, %v451_v50 }
  0xfc   : > { %v462_v57 = vadd.f32 %v1005_v34, %v442_v53  ;;  %v470_v58 = vadd.f32 %v1005_v34, %v450_v54  ;;  %v679_v59 = vpop.f32.mrb[4].mxu0  ;;  %v691_v60 = vpop.f32.mrb[4].mxu1 }
  0xfd   : > { %479 = vst [vmem:[%s1013_s9 + $0x18] sm:$0xff] %v463_v55  ;;  %487 = vst [vmem:[%s1013_s9 + $0x58] sm:$0xff] %v471_v56  ;;  %v445_v61 = vmul.f32 %v679_v59, %v439_v33  ;;  %v453_v62 = vmul.f32 %v691_v60, %v439_v33  ;;  %v376_v63 = vpop.f32.mrb[5].mxu0  ;;  %v416_v0 = vpop.f32.mrb[5].mxu1 }
  0xfe   : > { %478 = vst [vmem:[%s1013_s9 + $0x10] sm:$0xff] %v462_v57  ;;  %486 = vst [vmem:[%s1013_s9 + $0x50] sm:$0xff] %v470_v58  ;;  %v444_v1 = vmul.f32 %v439_v33, %v376_v63  ;;  %v452_v2 = vmul.f32 %v439_v33, %v416_v0 }
  0xff   : > { %v465_v3 = vadd.f32 %v1005_v34, %v445_v61  ;;  %v473_v4 = vadd.f32 %v1005_v34, %v453_v62 }
 0x100   : > { %v464_v5 = vadd.f32 %v1005_v34, %v444_v1  ;;  %v472_v6 = vadd.f32 %v1005_v34, %v452_v2  ;;  %v682_v7 = vpop.f32.mrb[6].mxu0  ;;  %v694_v8 = vpop.f32.mrb[6].mxu1 }
 0x101   : > { %481 = vst [vmem:[%s1013_s9 + $0x28] sm:$0xff] %v465_v3  ;;  %489 = vst [vmem:[%s1013_s9 + $0x68] sm:$0xff] %v473_v4  ;;  %v447_v9 = vmul.f32 %v682_v7, %v439_v33  ;;  %v455_v10 = vmul.f32 %v694_v8, %v439_v33  ;;  %v386_v11 = vpop.f32.mrb[7].mxu0  ;;  %v426_v12 = vpop.f32.mrb[7].mxu1 }
 0x102   : > { %480 = vst [vmem:[%s1013_s9 + $0x20] sm:$0xff] %v464_v5  ;;  %488 = vst [vmem:[%s1013_s9 + $0x60] sm:$0xff] %v472_v6  ;;  %v446_v13 = vmul.f32 %v439_v33, %v386_v11  ;;  %v454_v14 = vmul.f32 %v439_v33, %v426_v12 }
 0x103   : > { %v467_v15 = vadd.f32 %v1005_v34, %v447_v9  ;;  %v475_v16 = vadd.f32 %v1005_v34, %v455_v10 }
 0x104   : > { %v466_v17 = vadd.f32 %v1005_v34, %v446_v13  ;;  %v474_v18 = vadd.f32 %v1005_v34, %v454_v14 }
 0x105   : > { %483 = vst [vmem:[%s1013_s9 + $0x38] sm:$0xff] %v467_v15  ;;  %491 = vst [vmem:[%s1013_s9 + $0x78] sm:$0xff] %v475_v16 }
 0x106   : > { %482 = vst [vmem:[%s1013_s9 + $0x30] sm:$0xff] %v466_v17  ;;  %490 = vst [vmem:[%s1013_s9 + $0x70] sm:$0xff] %v474_v18 }
 0x107   : > { %789 = shalt.err (!%p786_p5)
}
 0x108   : > { %s790_s29 = scalar_lea.hbm %s1042_s19, 2048  ;;  %s794_s5 = scalar_lea.hbm %s1103_s3, 4096 }
 0x109   : > { %p791_p6 = scmp.ne.s32.totalorder %s1042_s19, %s790_s29  ;;  %p795_p10 = scmp.lt.u32.totalorder %s1042_s19, %s1103_s3 }
 0x10a   : > { %p796_p11 = scmp.lt.u32.totalorder %s794_s5, %s790_s29  ;;  %p798_p13 = scmp.lt.u32.totalorder %s790_s29, %s1042_s19 }
 0x10b   : > { %p792_p7 = pnand %p791_p6, %p919_p4 }
 0x10c   : > { %p797_p12 = por %p796_p11, %p795_p10 }
 0x10d   : > { %p793_p9 = pneg %p792_p7 }
 0x10e   : > { %p799_p0 = por %p798_p13, %p797_p12 }
 0x110   : > { %p800_p1 = pnand %p799_p0, %p793_p9 }
 0x112   : > { %803 = shalt.err (!%p800_p1)
}
 0x113   : > { %s857_s8 = smov 128   ;;  %s858_s9 = smov 8  }
 0x114   : > { %719 = dma.vmem_to_hbm [thread:$0]  (%p919_p4), %s1044_s11, 2048, %s1042_s19, %s1054_s21, %s857_s8, %s857_s8, %s858_s9  }
 0x115 PF: > { %p725_p2 = scmp.ge.s32.totalorder %s854_s17, 2  ;;  %s523_s10 = sand.u32 1, %s834_s12  }
 0x116   : > { %s524_s15 = scalar_lea.sflag [#allocation3], %s523_s10 }
 0x117   : > { %p722_p3 = pnand %p725_p2, %p926_p8 }
 0x119   : > { %829 = dma.done.wait (!%p722_p3), %s524_s15, 2048  }
 0x11a   : > { %831 = vsyncadd (!%p722_p3), %s524_s15, 4294965248  ;;  %s16_s17 = sadd.s32 1, %s854_s17   ;;  %s1106_s12 = smov %s838_s13 }
 0x11b   : > { %p13_p5 = scmp.ge.s32.totalorder %s16_s17, 4   ;;  %s1107_s13 = smov %s842_s14 }
 0x11c   : > { %s1108_s14 = smov %s932_s25  ;;  %s1109_s15 = smov %s850_s16 }
 0x11d   : > { %s1110_s16 = smov %s1112_s20  ;;  %15 = sbr.rel (!%p13_p5) target bundleno = 4 (0x4), region = 70 }
 0x124   :  { %529 = vsyncpa [#allocation3], 1 }
 0x125   :  { %531 = vsyncpa [#allocation3 + $0x1], 1 }

// kernel: _csl_forward.1
= control target key start
LH: loop header
LB: loop body
LE: loop exit
PB: predicated region body
PF: predicated region fallthrough
CT: control target
= control target key end

     0   :  { %8 = vsyncpa [#allocation3], 0  ;;  %s1100_s0 = inlined_call_operand.vmem [shape: f32[2,128,64], index: 0, kind: input, shape index: {}]   ;;  %s1101_s1 = inlined_call_operand.vmem [shape: f32[64,128], index: 1, kind: input, shape index: {}]   ;;  %s1102_s2 = inlined_call_operand.vmem [shape: f32[2,2,128], index: 2, kind: input, shape index: {}]   ;;  %s1103_s3 = inlined_call_operand.hbm [shape: f32[2,128,128], index: 3, kind: output, shape index: {}]  }
   0x1   :  { %10 = vsyncpa [#allocation3 + $0x1], 0  ;;  %s879_s12 = smov 0   ;;  %s881_s13 = smov 0  }
   0x2   :  { %s883_s14 = smov 0   ;;  %s885_s15 = smov 0  }
   0x3   :  { %s887_s16 = smov 0   ;;  %s889_s17 = smov 0  }
   0x4 LB: > { %s599_s18 = sadd.s32 4294967295, %s854_s17   ;;  %s600_s19 = sadd.s32 4294967294, %s854_s17   ;;  %s854_s17 = sphi %s889_s17, %s16_s17   ;;  %s850_s16 = sphi %s887_s16, %s1110_s16   ;;  %s846_s15 = sphi %s885_s15, %s1109_s15   ;;  %s842_s14 = sphi %s883_s14, %s1108_s14   ;;  %s838_s13 = sphi %s881_s13, %s1107_s13   ;;  %s834_s12 = sphi %s879_s12, %s1106_s12  }
   0x5   : > { %s28_s20 = sadd.s32 1, %s850_s16  ;;  %s112_s21 = sadd.s32 1, %s842_s14 }
   0x6   : > { %p30_p0 = scmp.ge.s32.totalorder %s28_s20, 2  ;;  %p122_p1 = scmp.ne.s32.totalorder %s842_s14, %s838_s13 }
   0x7   : > { %p123_p2 = scmp.eq.s32.totalorder %s599_s18, 1  ;;  %p128_p3 = scmp.ne.s32.totalorder %s838_s13, %s834_s12 }
   0x8   : > { %s1112_s20 = smov (%p30_p0, %s28_s20), 0  ;;  %p129_p5 = scmp.eq.s32.totalorder %s600_s19, 1 }
   0x9   : > { %p919_p4 = por %p123_p2, %p122_p1  ;;  %s107_s23 = ssub.s32 %s850_s16, %s1112_s20 }
   0xa   : > { %p603_p6 = scmp.ge.s32.totalorder %s854_s17, 1  ;;  %p110_p7 = scmp.eq.s32.totalorder %s107_s23, 0 }
   0xb   : > { %p926_p8 = por %p129_p5, %p128_p3  ;;  %p170_p9 = scmp.lt.s32.totalorder %s854_s17, 3 }
   0xc   : > { %s932_s25 = scalar_select %p110_p7, %s842_s14, %s112_s21  }
   0xd   : > { %p171_p10 = pnand %p603_p6, %p170_p9 }
   0xe   : > { %v233_v0 = vld [vmem:[%s1101_s1] sm:$0xff] (!%p171_p10)  ;;  %v234_v1 = vld [vmem:[%s1101_s1 + $0x8] sm:$0xff] (!%p171_p10)  ;;  %v235_v2 = vld [vmem:[%s1101_s1 + $0x10] sm:$0xff] (!%p171_p10)  ;;  %p203_p11 = scmp.lt.s32.totalorder (!%p171_p10), %s846_s15, 1  ;;  %vm241_vm0 = vcmask (!%p171_p10), 523264   ;;  %v436_v28 = vlaneseq (!%p171_p10)  ;;  %s199_s7 = sand.u32 (!%p171_p10), 1, %s838_s13  }
   0xf   : > { %174 = sbr.rel (%p171_p10) target bundleno = 277 (0x115), region = 32  ;;  %v695_v3 = vpack.c.bf16 (!%p171_p10), %v234_v1, %v233_v0  ;;  %v236_v4 = vld [vmem:[%s1101_s1 + $0x18] sm:$0xff] (!%p171_p10)  ;;  %v237_v6 = vld [vmem:[%s1101_s1 + $0x20] sm:$0xff] (!%p171_p10)  ;;  %v238_v7 = vld [vmem:[%s1101_s1 + $0x28] sm:$0xff] (!%p171_p10)  ;;  %s604_s8 = sshll.u32 (!%p171_p10), %s199_s7, 7 }
  0x10   : > { %v699_v5 = vpack.c.bf16 (!%p171_p10), %v236_v4, %v235_v2  ;;  %v703_v8 = vpack.c.bf16 (!%p171_p10), %v238_v7, %v237_v6  ;;  %v239_v9 = vld [vmem:[%s1101_s1 + $0x30] sm:$0xff] (!%p171_p10)  ;;  %v240_v10 = vld [vmem:[%s1101_s1 + $0x38] sm:$0xff] (!%p171_p10)  ;;  %v437_v29 = vshrl.u32 (!%p171_p10), %v436_v28, 7  ;;  %s1013_s9 = scalar_lea.vmem (!%p171_p10), [#allocation2], %s604_s8  ;;  %s630_s10 = sshll.u32 (!%p171_p10), %s846_s15, 11 }
  0x11   : > { %696 = vmatprep.subr.bf16.mxu0 (!%p171_p10), %v695_v3  ;;  %711 = vmatprep.subr.bf16.mxu1 (!%p171_p10), %v695_v3  ;;  %v707_v13 = vpack.c.bf16 (!%p171_p10), %v240_v10, %v239_v9  ;;  %s1042_s19 = scalar_lea.hbm (!%p171_p10), %s1103_s3, %s630_s10  ;;  %s1054_s21 = scalar_lea.sflag (!%p171_p10), [#allocation3], %s199_s7 }
  0x12   : > { %698 = vmatpush3.bf16.msra.mxu0 (!%p171_p10), %v695_v3  ;;  %715 = vmatpush3.bf16.msra.mxu1 (!%p171_p10), %v695_v3  ;;  %v438_v30 = vsub.s32 (!%p171_p10), 0, %v437_v29  ;;  %v458_v32 = vsub.s32 (!%p171_p10), 1, %v437_v29  ;;  %s856_s26 = smov (!%p171_p10), [#allocation2]  }
  0x13   : > { %700 = vmatprep.subr.bf16.mxu0 (!%p171_p10), %v699_v5  ;;  %712 = vmatprep.subr.bf16.mxu1 (!%p171_p10), %v699_v5 }
  0x16   : > { %s954_s11 = scalar_select %p203_p11, %s846_s15, 1  ;;  %702 = vmatpush3.bf16.msra.mxu0 %v699_v5  ;;  %716 = vmatpush3.bf16.msra.mxu1 %v699_v5 }
  0x17   : > { %704 = vmatprep.subr.bf16.mxu0 %v703_v8  ;;  %713 = vmatprep.subr.bf16.mxu1 %v703_v8 }
  0x18   : > { %s629_s18 = sshll.u32 %s954_s11, 7  ;;  %s607_s30 = sshll.u32 %s954_s11, 1 }
  0x19   : > { %s963_s27 = scalar_lea.vmem %s1100_s0, %s629_s18  ;;  %s215_s6 = scalar_lea.vmem %s1102_s2, %s607_s30 }
  0x1a   : > { %v217_v11 = vld [vmem:[%s963_s27] sm:$0xff]  ;;  %706 = vmatpush3.bf16.msra.mxu0 %v703_v8  ;;  %717 = vmatpush3.bf16.msra.mxu1 %v703_v8  ;;  %v218_v14 = vld [vmem:[%s963_s27 + $0x8] sm:$0xff]  ;;  %v219_v16 = vld [vmem:[%s963_s27 + $0x10] sm:$0xff]  ;;  %s508_s11 = sshll.u32 %s1013_s9, 4  ;;  %s1044_s11 = int_to_ptr.vmem [resolvable:$true] %s508_s11 }
  0x1b   : > { %v225_v12 = vld [vmem:[%s963_s27 + $0x40] sm:$0xff]  ;;  %671 = vmatprep.mubr.msk.f32.mxu0 %vm241_vm0, %v217_v11  ;;  %708 = vmatprep.subr.bf16.mxu0 %v707_v13  ;;  %v226_v15 = vld [vmem:[%s963_s27 + $0x48] sm:$0xff]  ;;  %v227_v17 = vld [vmem:[%s963_s27 + $0x50] sm:$0xff]  ;;  %s776_s23 = scalar_lea.vmem %s1044_s11, 2048 }
  0x1c   : > { %683 = vmatprep.mubr.msk.f32.mxu1 %vm241_vm0, %v225_v12  ;;  %714 = vmatprep.subr.bf16.mxu1 %v707_v13  ;;  %v220_v18 = vld [vmem:[%s963_s27 + $0x18] sm:$0xff]  ;;  %v221_v20 = vld [vmem:[%s963_s27 + $0x20] sm:$0xff]  ;;  %v222_v22 = vld [vmem:[%s963_s27 + $0x28] sm:$0xff]  ;;  %p777_p12 = scmp.ne.s32.totalorder %s1044_s11, %s776_s23 }
  0x1d   : > { %v228_v19 = vld [vmem:[%s963_s27 + $0x58] sm:$0xff]  ;;  %v229_v21 = vld [vmem:[%s963_s27 + $0x60] sm:$0xff]  ;;  %v230_v23 = vld [vmem:[%s963_s27 + $0x68] sm:$0xff] }
  0x1e   : > { %710 = vmatpush3.bf16.msra.mxu0 %v707_v13  ;;  %718 = vmatpush3.bf16.msra.mxu1 %v707_v13  ;;  %v223_v24 = vld [vmem:[%s963_s27 + $0x30] sm:$0xff]  ;;  %v224_v26 = vld [vmem:[%s963_s27 + $0x38] sm:$0xff]  ;;  %v435_v31 = vld [vmem:[%s215_s6] sm:$0x3]  ;;  %p778_p13 = pnand %p777_p12, %p919_p4 }
  0x1f   : > { %v231_v25 = vld [vmem:[%s963_s27 + $0x70] sm:$0xff]  ;;  %v232_v27 = vld [vmem:[%s963_s27 + $0x78] sm:$0xff]  ;;  %v439_v33 = vrot.slane %v435_v31, %v438_v30  ;;  %v1005_v34 = vrot.slane %v435_v31, %v458_v32  ;;  %s780_s27 = sshll.u32 %s856_s26, 4  ;;  %s781_s27 = int_to_ptr.vmem [resolvable:$false] %s780_s27 }
  0x20   : > { %p779_p0 = pneg %p778_p13  ;;  %s782_s28 = scalar_lea.vmem %s781_s27, 4096 }
  0x21   : > { %672 = vmatmul.mubr.msk.f32.vlgmr.msra.gmra.mrb[0].mxu0 %vm241_vm0, %v218_v14  ;;  %684 = vmatmul.mubr.msk.f32.vlgmr.msra.gmra.mrb[0].mxu1 %vm241_vm0, %v226_v15  ;;  %p783_p1 = scmp.lt.s32.totalorder %s1044_s11, %s781_s27  ;;  %p784_p2 = scmp.lt.s32.totalorder %s782_s28, %s776_s23 }
  0x22   : > { %674 = vmatprep.mubr.msk.f32.mxu0 %vm241_vm0, %v219_v16  ;;  %686 = vmatprep.mubr.msk.f32.mxu1 %vm241_vm0, %v227_v17 }
  0x23   : > { %p785_p3 = por %p784_p2, %p783_p1 }
  0x25   : > { %675 = vmatmul.mubr.msk.f32.gmra.mrb[2].mxu0 %vm241_vm0, %v220_v18  ;;  %687 = vmatmul.mubr.msk.f32.gmra.mrb[2].mxu1 %vm241_vm0, %v228_v19  ;;  %p786_p5 = pnand %p785_p3, %p779_p0 }
  0x26   : > { %677 = vmatprep.mubr.msk.f32.mxu0 %vm241_vm0, %v221_v20  ;;  %689 = vmatprep.mubr.msk.f32.mxu1 %vm241_vm0, %v229_v21 }
  0x29   : > { %678 = vmatmul.mubr.msk.f32.gmra.mrb[4].mxu0 %vm241_vm0, %v222_v22  ;;  %690 = vmatmul.mubr.msk.f32.gmra.mrb[4].mxu1 %vm241_vm0, %v230_v23 }
  0x2a   : > { %680 = vmatprep.mubr.msk.f32.mxu0 %vm241_vm0, %v223_v24  ;;  %692 = vmatprep.mubr.msk.f32.mxu1 %vm241_vm0, %v231_v25 }
  0x2d   : > { %681 = vmatmul.mubr.msk.f32.gmra.mrb[6].mxu0 %vm241_vm0, %v224_v26  ;;  %693 = vmatmul.mubr.msk.f32.gmra.mrb[6].mxu1 %vm241_vm0, %v232_v27 }
  0xf4   : > { %v673_v35 = vpop.f32.mrb[0].mxu0  ;;  %v685_v36 = vpop.f32.mrb[0].mxu1 }
  0xf5   : > { %v441_v37 = vmul.f32 %v673_v35, %v439_v33  ;;  %v449_v38 = vmul.f32 %v685_v36, %v439_v33  ;;  %v356_v39 = vpop.f32.mrb[1].mxu0  ;;  %v396_v40 = vpop.f32.mrb[1].mxu1 }
  0xf6   : > { %v440_v41 = vmul.f32 %v439_v33, %v356_v39  ;;  %v448_v42 = vmul.f32 %v439_v33, %v396_v40 }
  0xf7   : > { %v461_v43 = vadd.f32 %v1005_v34, %v441_v37  ;;  %v469_v44 = vadd.f32 %v1005_v34, %v449_v38 }
  0xf8   : > { %v460_v45 = vadd.f32 %v1005_v34, %v440_v41  ;;  %v468_v46 = vadd.f32 %v1005_v34, %v448_v42  ;;  %v676_v47 = vpop.f32.mrb[2].mxu0  ;;  %v688_v48 = vpop.f32.mrb[2].mxu1 }
  0xf9   : > { %477 = vst [vmem:[%s1013_s9 + $0x8] sm:$0xff] %v461_v43  ;;  %485 = vst [vmem:[%s1013_s9 + $0x48] sm:$0xff] %v469_v44  ;;  %v443_v49 = vmul.f32 %v676_v47, %v439_v33  ;;  %v451_v50 = vmul.f32 %v688_v48, %v439_v33  ;;  %v366_v51 = vpop.f32.mrb[3].mxu0  ;;  %v406_v52 = vpop.f32.mrb[3].mxu1 }
  0xfa   : > { %476 = vst [vmem:[%s1013_s9] sm:$0xff] %v460_v45  ;;  %484 = vst [vmem:[%s1013_s9 + $0x40] sm:$0xff] %v468_v46  ;;  %v442_v53 = vmul.f32 %v439_v33, %v366_v51  ;;  %v450_v54 = vmul.f32 %v439_v33, %v406_v52 }
  0xfb   : > { %v463_v55 = vadd.f32 %v1005_v34, %v443_v49  ;;  %v471_v56 = vadd.f32 %v1005_v34, %v451_v50 }
  0xfc   : > { %v462_v57 = vadd.f32 %v1005_v34, %v442_v53  ;;  %v470_v58 = vadd.f32 %v1005_v34, %v450_v54  ;;  %v679_v59 = vpop.f32.mrb[4].mxu0  ;;  %v691_v60 = vpop.f32.mrb[4].mxu1 }
  0xfd   : > { %479 = vst [vmem:[%s1013_s9 + $0x18] sm:$0xff] %v463_v55  ;;  %487 = vst [vmem:[%s1013_s9 + $0x58] sm:$0xff] %v471_v56  ;;  %v445_v61 = vmul.f32 %v679_v59, %v439_v33  ;;  %v453_v62 = vmul.f32 %v691_v60, %v439_v33  ;;  %v376_v63 = vpop.f32.mrb[5].mxu0  ;;  %v416_v0 = vpop.f32.mrb[5].mxu1 }
  0xfe   : > { %478 = vst [vmem:[%s1013_s9 + $0x10] sm:$0xff] %v462_v57  ;;  %486 = vst [vmem:[%s1013_s9 + $0x50] sm:$0xff] %v470_v58  ;;  %v444_v1 = vmul.f32 %v439_v33, %v376_v63  ;;  %v452_v2 = vmul.f32 %v439_v33, %v416_v0 }
  0xff   : > { %v465_v3 = vadd.f32 %v1005_v34, %v445_v61  ;;  %v473_v4 = vadd.f32 %v1005_v34, %v453_v62 }
 0x100   : > { %v464_v5 = vadd.f32 %v1005_v34, %v444_v1  ;;  %v472_v6 = vadd.f32 %v1005_v34, %v452_v2  ;;  %v682_v7 = vpop.f32.mrb[6].mxu0  ;;  %v694_v8 = vpop.f32.mrb[6].mxu1 }
 0x101   : > { %481 = vst [vmem:[%s1013_s9 + $0x28] sm:$0xff] %v465_v3  ;;  %489 = vst [vmem:[%s1013_s9 + $0x68] sm:$0xff] %v473_v4  ;;  %v447_v9 = vmul.f32 %v682_v7, %v439_v33  ;;  %v455_v10 = vmul.f32 %v694_v8, %v439_v33  ;;  %v386_v11 = vpop.f32.mrb[7].mxu0  ;;  %v426_v12 = vpop.f32.mrb[7].mxu1 }
 0x102   : > { %480 = vst [vmem:[%s1013_s9 + $0x20] sm:$0xff] %v464_v5  ;;  %488 = vst [vmem:[%s1013_s9 + $0x60] sm:$0xff] %v472_v6  ;;  %v446_v13 = vmul.f32 %v439_v33, %v386_v11  ;;  %v454_v14 = vmul.f32 %v439_v33, %v426_v12 }
 0x103   : > { %v467_v15 = vadd.f32 %v1005_v34, %v447_v9  ;;  %v475_v16 = vadd.f32 %v1005_v34, %v455_v10 }
 0x104   : > { %v466_v17 = vadd.f32 %v1005_v34, %v446_v13  ;;  %v474_v18 = vadd.f32 %v1005_v34, %v454_v14 }
 0x105   : > { %483 = vst [vmem:[%s1013_s9 + $0x38] sm:$0xff] %v467_v15  ;;  %491 = vst [vmem:[%s1013_s9 + $0x78] sm:$0xff] %v475_v16 }
 0x106   : > { %482 = vst [vmem:[%s1013_s9 + $0x30] sm:$0xff] %v466_v17  ;;  %490 = vst [vmem:[%s1013_s9 + $0x70] sm:$0xff] %v474_v18 }
 0x107   : > { %789 = shalt.err (!%p786_p5)
}
 0x108   : > { %s790_s29 = scalar_lea.hbm %s1042_s19, 2048  ;;  %s794_s5 = scalar_lea.hbm %s1103_s3, 4096 }
 0x109   : > { %p791_p6 = scmp.ne.s32.totalorder %s1042_s19, %s790_s29  ;;  %p795_p10 = scmp.lt.u32.totalorder %s1042_s19, %s1103_s3 }
 0x10a   : > { %p796_p11 = scmp.lt.u32.totalorder %s794_s5, %s790_s29  ;;  %p798_p13 = scmp.lt.u32.totalorder %s790_s29, %s1042_s19 }
 0x10b   : > { %p792_p7 = pnand %p791_p6, %p919_p4 }
 0x10c   : > { %p797_p12 = por %p796_p11, %p795_p10 }
 0x10d   : > { %p793_p9 = pneg %p792_p7 }
 0x10e   : > { %p799_p0 = por %p798_p13, %p797_p12 }
 0x110   : > { %p800_p1 = pnand %p799_p0, %p793_p9 }
 0x112   : > { %803 = shalt.err (!%p800_p1)
}
 0x113   : > { %s857_s8 = smov 128   ;;  %s858_s9 = smov 8  }
 0x114   : > { %719 = dma.vmem_to_hbm [thread:$0]  (%p919_p4), %s1044_s11, 2048, %s1042_s19, %s1054_s21, %s857_s8, %s857_s8, %s858_s9  }
 0x115 PF: > { %p725_p2 = scmp.ge.s32.totalorder %s854_s17, 2  ;;  %s523_s10 = sand.u32 1, %s834_s12  }
 0x116   : > { %s524_s15 = scalar_lea.sflag [#allocation3], %s523_s10 }
 0x117   : > { %p722_p3 = pnand %p725_p2, %p926_p8 }
 0x119   : > { %829 = dma.done.wait (!%p722_p3), %s524_s15, 2048  }
 0x11a   : > { %831 = vsyncadd (!%p722_p3), %s524_s15, 4294965248  ;;  %s16_s17 = sadd.s32 1, %s854_s17   ;;  %s1106_s12 = smov %s838_s13 }
 0x11b   : > { %p13_p5 = scmp.ge.s32.totalorder %s16_s17, 4   ;;  %s1107_s13 = smov %s842_s14 }
 0x11c   : > { %s1108_s14 = smov %s932_s25  ;;  %s1109_s15 = smov %s850_s16 }
 0x11d   : > { %s1110_s16 = smov %s1112_s20  ;;  %15 = sbr.rel (!%p13_p5) target bundleno = 4 (0x4), region = 70 }
 0x124   :  { %529 = vsyncpa [#allocation3], 1 }
 0x125   :  { %531 = vsyncpa [#allocation3 + $0x1], 1 }

</bundles_post_ra>
